<compile_context>
chip_gen: v7x
topology: tpu7x:2x2x1
jax: 0.10.0
libtpu: 0.0.40
codegen_flags: <defaults>
</compile_context>

<pallas_src>
import functools

import jax
import jax.numpy as jnp
from jax.experimental import pallas as pl
from jax.experimental.pallas import tpu as pltpu


_SINGLE_K_MAX_L = 1024   # collapse the K axis when the padded latent dim <= this
_BK_TILED = 256          # contraction tile when K axis is kept (v6e/v7x MXU width)


def _round_up(x, m):
    return ((x + m - 1) // m) * m


# ----------------------------- kernels --------------------------------------

def _decoder_kernel_fused(z_ref, w_ref, b_ref, h_ref):
    # z: (bm, L_pad) bf16, w: (L_pad, bn) bf16, b: (1, bn) f32, h: (bm, bn) f32
    acc = jnp.dot(z_ref[...], w_ref[...], preferred_element_type=jnp.float32)
    h_ref[...] = jnp.tanh(acc + b_ref[...]).astype(h_ref.dtype)


def _decoder_kernel_tiled(z_ref, w_ref, b_ref, h_ref, acc_ref):
    # z: (bm, bk) bf16, w: (bk, bn) bf16, b: (1, bn) f32
    # acc: (bm, bn) f32 VMEM scratch, resident across the K grid axis.
    k = pl.program_id(2)

    @pl.when(k == 0)
    def _init():
        # Fold bias into the accumulator init (free: init writes the whole tile).
        acc_ref[...] = jnp.broadcast_to(b_ref[...], acc_ref.shape)

    acc_ref[...] += jnp.dot(z_ref[...], w_ref[...],
                            preferred_element_type=jnp.float32)

    @pl.when(k == pl.num_programs(2) - 1)
    def _finalize():
        h_ref[...] = jnp.tanh(acc_ref[...]).astype(h_ref.dtype)


# --------------------------- host-side helpers -------------------------------

def prepare_decoder_params(w, b):
    """One-time (init-time) weight preprocessing: zero-pad to lane-dense shapes
    and cast to bf16.  Zero padding is exact for the matmul."""
    L, H = w.shape
    if _round_up(L, 128) <= _SINGLE_K_MAX_L:
        L_pad = _round_up(L, 128)
    else:
        L_pad = _round_up(L, _BK_TILED)
    H_pad = _round_up(H, 128)

    w_p = jnp.zeros((L_pad, H_pad), jnp.bfloat16)
    w_p = w_p.at[:L, :H].set(w.astype(jnp.bfloat16))
    b_p = jnp.zeros((1, H_pad), jnp.float32)
    b_p = b_p.at[:, :H].set(b.reshape(1, H).astype(jnp.float32))
    return w_p, b_p


def _choose_bn(n_i, H_pad):
    # Lane-dense output tile.  Keep >= 2 parallel output blocks when possible
    # (v7x: 2 TensorCores need >= 2 parallel blocks to both do work) and cap at
    # 1024 so double-buffered tiles stay well inside v7x's 64 MiB VMEM.
    for cand in (1024, 512, 256, 128):
        if cand <= H_pad and H_pad % cand == 0:
            if n_i * (H_pad // cand) >= 2 or cand == 128:
                return cand
    return H_pad


def graph_rnn_decoder_forward(latent_encoding, w_p, b_p, *, hidden_size=None):
    """latent_encoding: (B, latent_size) f32 (or bf16)
       w_p: (L_pad, H_pad) bf16 pre-padded weight (from prepare_decoder_params)
       b_p: (1, H_pad) f32 pre-padded bias
       returns: (B, hidden_size) f32
    """
    B, L = latent_encoding.shape
    L_pad, H_pad = w_p.shape
    H = H_pad if hidden_size is None else hidden_size
    assert L <= L_pad and H <= H_pad

    # Batch padding: bf16 packs 16 rows per vreg sublane group.
    B_pad = _round_up(B, 16)
    bm = min(256, B_pad)
    B_pad = _round_up(B_pad, bm)
    n_i = B_pad // bm

    bn = _choose_bn(n_i, H_pad)
    n_j = H_pad // bn

    # Per-call z pad + bf16 cast (only per-call host-side cost; skipped if
    # already aligned & bf16).  Zero padding is exact.
    if (B_pad, L_pad) == (B, L) and latent_encoding.dtype == jnp.bfloat16:
        z_p = latent_encoding
    else:
        z_p = jnp.zeros((B_pad, L_pad), jnp.bfloat16)
        z_p = z_p.at[:B, :L].set(latent_encoding.astype(jnp.bfloat16))

    cost = pl.CostEstimate(
        flops=2 * B_pad * L_pad * H_pad,
        transcendentals=B_pad * H_pad,
        bytes_accessed=2 * (B_pad * L_pad + L_pad * H_pad)
                       + 4 * (H_pad + B_pad * H_pad),
    )

    if L_pad <= _SINGLE_K_MAX_L:
        # Single-K fused path: no accumulator, no pl.when, no per-k grid
        # overhead.  Batch axis innermost -> the (L_pad, bn) weight panel is
        # VMEM-resident across batch tiles (W streamed from HBM once).
        grid = (n_j, n_i)
        grid_spec = pltpu.PrefetchScalarGridSpec(
            num_scalar_prefetch=0,
            grid=grid,
            in_specs=[
                pl.BlockSpec((bm, L_pad), lambda j, i: (i, 0)),   # z tile
                pl.BlockSpec((L_pad, bn), lambda j, i: (0, j)),   # W panel (resident over i)
                pl.BlockSpec((1, bn), lambda j, i: (0, j)),       # bias tile
            ],
            out_specs=pl.BlockSpec((bm, bn), lambda j, i: (i, j)),
        )
        out_p = pl.pallas_call(
            _decoder_kernel_fused,
            grid_spec=grid_spec,
            out_shape=jax.ShapeDtypeStruct((B_pad, H_pad), jnp.float32),
            compiler_params=pltpu.CompilerParams(
                dimension_semantics=("parallel", "parallel"),
            ),
            cost_estimate=cost,
        )(z_p, w_p, b_p)
    else:
        # Large latent dim: reduction-last grid, bk = 256 (v6e/v7x MXU width),
        # f32 VMEM accumulator with bias folded into init.
        bk = _BK_TILED
        n_k = L_pad // bk
        grid = (n_j, n_i, n_k)
        grid_spec = pltpu.PrefetchScalarGridSpec(
            num_scalar_prefetch=0,
            grid=grid,
            in_specs=[
                pl.BlockSpec((bm, bk), lambda j, i, k: (i, k)),
                pl.BlockSpec((bk, bn), lambda j, i, k: (k, j)),
                pl.BlockSpec((1, bn), lambda j, i, k: (0, j)),
            ],
            out_specs=pl.BlockSpec((bm, bn), lambda j, i, k: (i, j)),
            scratch_shapes=[pltpu.VMEM((bm, bn), jnp.float32)],
        )
        out_p = pl.pallas_call(
            _decoder_kernel_tiled,
            grid_spec=grid_spec,
            out_shape=jax.ShapeDtypeStruct((B_pad, H_pad), jnp.float32),
            compiler_params=pltpu.CompilerParams(
                dimension_semantics=("parallel", "parallel", "arbitrary"),
            ),
            cost_estimate=cost,
        )(z_p, w_p, b_p)

    if B_pad == B and H_pad == H:
        return out_p          # aligned: skip the post-kernel slice entirely
    return out_p[:B, :H]


def init_params(latent_size, hidden_size, key):
    k_w, k_b = jax.random.split(key)
    scale = 1.0 / jnp.sqrt(jnp.float32(latent_size))
    w = jax.random.uniform(k_w, (latent_size, hidden_size),
                           minval=-scale, maxval=scale, dtype=jnp.float32)
    b = jax.random.uniform(k_b, (1, hidden_size),
                           minval=-scale, maxval=scale, dtype=jnp.float32)
    return w, b


if __name__ == "__main__":
    key = jax.random.PRNGKey(0)
    k_z, k_p = jax.random.split(key)

    batch = 8
    latent_size = 32
    hidden_size = 32

    latent_encoding = jax.random.normal(
        k_z, (batch, latent_size), dtype=jnp.float32)
    w, b = init_params(latent_size, hidden_size, k_p)

    # One-time init-time weight preprocessing (pad + bf16 cast).
    w_p, b_p = prepare_decoder_params(w, b)

    fwd = jax.jit(functools.partial(graph_rnn_decoder_forward,
                                    hidden_size=hidden_size))
    h = fwd(latent_encoding, w_p, b_p)
    jax.block_until_ready(h)

    # Sanity check against plain-JAX f32 reference (kernel uses bf16 MXU
    # operands with f32 accumulation, so allow bf16-level tolerance).
    ref = jnp.tanh(latent_encoding @ w + b)
    assert h.shape == (batch, hidden_size)
    assert jnp.allclose(h, ref, atol=2e-2, rtol=2e-2), (
        float(jnp.max(jnp.abs(h - ref))))

    print("KERNEL_OK")
</pallas_src>

<mosaic_0001>
module attributes {stable_mosaic.version = 11 : i64} {
  func.func @_decoder_kernel_fused(%arg0: i32, %arg1: i32, %arg2: memref<16x128xbf16, #tpu.memory_space<vmem>>, %arg3: memref<128x128xbf16, #tpu.memory_space<vmem>>, %arg4: memref<1x128xf32, #tpu.memory_space<vmem>>, %arg5: memref<16x128xf32, #tpu.memory_space<vmem>>) attributes {dimension_semantics = [#tpu.dimension_semantics<parallel>, #tpu.dimension_semantics<parallel>], iteration_bounds = array<i64: 1, 1>, scalar_prefetch = 0 : i64, scratch_operands = 0 : i64, tpu.core_type = #tpu.core_type<tc>, window_params = [{transform_indices = @transform_0, window_bounds = array<i64: 16, 128>}, {transform_indices = @transform_1, window_bounds = array<i64: 128, 128>}, {transform_indices = @transform_2, window_bounds = array<i64: 1, 128>}, {transform_indices = @transform_3, window_bounds = array<i64: 16, 128>}]} {
    %c0 = arith.constant 0 : index
    %c0_0 = arith.constant 0 : index
    %0 = vector.load %arg2[%c0, %c0_0] : memref<16x128xbf16, #tpu.memory_space<vmem>>, vector<16x128xbf16>
    %c0_1 = arith.constant 0 : index
    %c0_2 = arith.constant 0 : index
    %1 = vector.load %arg3[%c0_1, %c0_2] : memref<128x128xbf16, #tpu.memory_space<vmem>>, vector<128x128xbf16>
    %cst = arith.constant dense<0.000000e+00> : vector<16x128xf32>
    %2 = tpu.matmul %0, %1, %cst {dimension_numbers = #tpu.dot_dimension_numbers<[1], [0], [0], [1], [0, 0, 1, 1], [], []>} : vector<16x128xbf16>, vector<128x128xbf16>, vector<16x128xf32> -> vector<16x128xf32>
    %c0_3 = arith.constant 0 : index
    %c0_4 = arith.constant 0 : index
    %3 = vector.load %arg4[%c0_3, %c0_4] : memref<1x128xf32, #tpu.memory_space<vmem>>, vector<1x128xf32>
    %4 = vector.broadcast %3 : vector<1x128xf32> to vector<16x128xf32>
    %5 = arith.addf %2, %4 : vector<16x128xf32>
    %6 = math.tanh %5 : vector<16x128xf32>
    %c0_5 = arith.constant 0 : index
    %c0_6 = arith.constant 0 : index
    %7 = vector.load %arg5[%c0_5, %c0_6] : memref<16x128xf32, #tpu.memory_space<vmem>>, vector<16x128xf32>
    tpu.vector_store %arg5[%c0_5, %c0_6], %6 {strides = array<i32>} : memref<16x128xf32, #tpu.memory_space<vmem>>, vector<16x128xf32>,
    return
  }
  func.func @transform_0(%arg0: i32, %arg1: i32) -> (i32, i32) {
    %c0_i32 = arith.constant 0 : i32
    %c0_i32_0 = arith.constant 0 : i32
    return %arg1, %c0_i32 : i32, i32
  }
  func.func @transform_1(%arg0: i32, %arg1: i32) -> (i32, i32) {
    %c0_i32 = arith.constant 0 : i32
    %c0_i32_0 = arith.constant 0 : i32
    return %c0_i32, %arg0 : i32, i32
  }
  func.func @transform_2(%arg0: i32, %arg1: i32) -> (i32, i32) {
    %c0_i32 = arith.constant 0 : i32
    %c0_i32_0 = arith.constant 0 : i32
    return %c0_i32, %arg0 : i32, i32
  }
  func.func @transform_3(%arg0: i32, %arg1: i32) -> (i32, i32) {
    %c0_i32 = arith.constant 0 : i32
    return %arg1, %arg0 : i32, i32
  }
}

</mosaic_0001>

<bundles_post_ra>
// kernel: graph_rnn_decoder_forward.1
= control target key start
LH: loop header
LB: loop body
LE: loop exit
PB: predicated region body
PF: predicated region fallthrough
CT: control target
= control target key end

     0   :  { %8 = vsyncpa [#allocation3], 0  ;;  %s239_s12 = smov [#allocation2]   ;;  %s288_s0 = inlined_call_operand.vmem [shape: bf16[16,128], index: 0, kind: input, shape index: {}]   ;;  %s289_s1 = inlined_call_operand.hbm [shape: bf16[128,128], index: 1, kind: input, shape index: {}]   ;;  %s290_s2 = inlined_call_operand.vmem [shape: f32[1,128], index: 2, kind: input, shape index: {}]   ;;  %s291_s3 = inlined_call_operand.vmem [shape: f32[16,128], index: 3, kind: output, shape index: {}]  }
   0x1   :  { %s16_s13 = sshll.u32 %s239_s12, 4  ;;  %s215_s16 = scalar_lea.hbm %s289_s1, 1024  ;;  %s17_s13 = int_to_ptr.vmem [resolvable:$true] %s16_s13 }
   0x2   :  { %p216_p0 = scmp.ne.s32.totalorder %s289_s1, %s215_s16  ;;  %p219_p1 = scmp.lt.u32.totalorder %s215_s16, %s289_s1 }
   0x4   :  { %p221_p2 = pnand %p219_p1, %p216_p0 }
   0x6   :  { %224 = shalt.err (!%p221_p2)
}
   0x7   :  { %s225_s21 = scalar_lea.vmem %s17_s13, 1024  ;;  %p230_p4 = scmp.lt.s32.totalorder %s17_s13, %s17_s13 }
   0x8   :  { %p226_p3 = scmp.ne.s32.totalorder %s17_s13, %s225_s21  ;;  %p231_p5 = scmp.lt.s32.totalorder %s225_s21, %s225_s21 }
   0xa   :  { %p232_p6 = por %p231_p5, %p230_p4 }
   0xc   :  { %p233_p7 = pnand %p232_p6, %p226_p3 }
   0xe   :  { %236 = shalt.err (!%p233_p7)
}
   0xf   :  { %s240_s22 = smov 64   ;;  %s241_s23 = smov 4  }
  0x10   :  { %22 = dma.hbm_to_vmem [thread:$0]  %s289_s1, 1024, %s17_s13, [#allocation3], %s240_s22, %s240_s22, %s241_s23  }
  0x11   :  { %237 = dma.done.wait [#allocation3], 1024  }
  0x12   :  { %238 = vsyncadd [#allocation3], 4294966272  ;;  %v242_v0 = vmov 0.0   ;;  %vm243_vm0 = vmmov 0   ;;  %v202_v1 = vld [vmem:[#allocation2] sm:$0xff]   ;;  %v203_v2 = vld [vmem:[#allocation2 + $0x8] sm:$0xff]  }
  0x13   :  { %177 = vmatprep.subr.bf16.mxu0 %v242_v0  ;;  %193 = vmatprep.mubr.msk.bf16.mxu0 %vm243_vm0, %v242_v0  ;;  %v204_v3 = vld [vmem:[#allocation2 + $0x10] sm:$0xff]   ;;  %v205_v4 = vld [vmem:[#allocation2 + $0x18] sm:$0xff]   ;;  %v206_v5 = vld [vmem:[#allocation2 + $0x20] sm:$0xff]  }
  0x14   :  { %178 = vmatpush3.bf16.msra.mxu0 %v202_v1  ;;  %v207_v6 = vld [vmem:[#allocation2 + $0x28] sm:$0xff]   ;;  %v208_v7 = vld [vmem:[#allocation2 + $0x30] sm:$0xff]   ;;  %v209_v8 = vld [vmem:[#allocation2 + $0x38] sm:$0xff]  }
  0x15   :  { %179 = vmatprep.subr.bf16.mxu0 %v242_v0  ;;  %v210_v9 = vld [vmem:[%s288_s0] sm:$0xff]  }
  0x16   :  { %v158_v10 = vld [vmem:[%s290_s2] ss:$0 sm:$0xff] }
  0x18   :  { %180 = vmatpush3.bf16.msra.mxu0 %v203_v2 }
  0x19   :  { %181 = vmatprep.subr.bf16.mxu0 %v242_v0 }
  0x1c   :  { %182 = vmatpush3.bf16.msra.mxu0 %v204_v3 }
  0x1d   :  { %183 = vmatprep.subr.bf16.mxu0 %v242_v0 }
  0x20   :  { %184 = vmatpush3.bf16.msra.mxu0 %v205_v4 }
  0x21   :  { %185 = vmatprep.subr.bf16.mxu0 %v242_v0 }
  0x24   :  { %186 = vmatpush3.bf16.msra.mxu0 %v206_v5 }
  0x25   :  { %187 = vmatprep.subr.bf16.mxu0 %v242_v0 }
  0x28   :  { %188 = vmatpush3.bf16.msra.mxu0 %v207_v6 }
  0x29   :  { %189 = vmatprep.subr.bf16.mxu0 %v242_v0 }
  0x2c   :  { %190 = vmatpush3.bf16.msra.mxu0 %v208_v7 }
  0x2d   :  { %191 = vmatprep.subr.bf16.mxu0 %v242_v0 }
  0x30   :  { %192 = vmatpush3.bf16.msra.mxu0 %v209_v8 }
  0x33   :  { %194 = vmatmul.mubr.bf16.vlgmr.msra.gmra.mrb[0].mxu0 %v210_v9 }
 0x106   :  { %v142_v11 = vpop.f32.mrb[0].mxu0 }
 0x107   :  { %v143_v12 = vadd.f32 %v158_v10, %v142_v11  ;;  %v195_v13 = vpop.f32.mrb[1].mxu0 }
 0x108   :  { %v145_v14 = vpop.f32.mrb[2].mxu0 }
 0x109   :  { %211 = vtanh.f32 %v143_v12  ;;  %v146_v15 = vadd.f32 %v158_v10, %v145_v14  ;;  %v196_v16 = vpop.f32.mrb[3].mxu0 }
 0x10b   :  { %213 = vtanh.f32 %v146_v15 }
 0x113   :  { %v212_v17 = vpop.eup %211 }
 0x114   :  { %151 = vst [vmem:[%s291_s3] sm:$0xff] %v212_v17 }
 0x115   :  { %v214_v18 = vpop.eup %213 }
 0x116   :  { %152 = vst [vmem:[%s291_s3 + $0x8] sm:$0xff] %v214_v18 }
 0x117   :  { %157 = vsyncpa [#allocation3], 1 }

</bundles_post_ra>
